<compile_context>
chip_gen: v5e
topology: v5e:2x2
jax: 0.10.0
libtpu: 0.0.40
codegen_flags: <defaults>
</compile_context>

<pallas_src>
import functools

import jax
import jax.numpy as jnp
from jax.experimental import pallas as pl
from jax.experimental.pallas import tpu as pltpu


# ----------------------------------------------------------------------------
# Fused SE kernel
# ----------------------------------------------------------------------------
def _se_kernel(x_ref, w1_ref, w2_ref, o_ref, *, inv_hw):
    """x_ref: (bn, C, HW); w1_ref: (C, C//r); w2_ref: (C//r, C); o_ref: (bn, C, HW)."""
    x = x_ref[...]                                            # (bn, C, HW), native dtype
    # Squeeze: global average pool over the spatial (lane) axis, f32 accumulate.
    pooled = jnp.sum(x.astype(jnp.float32), axis=-1) * inv_hw  # (bn, C)
    # Excitation: batched FC -> ReLU -> FC -> sigmoid (MXU matmuls, f32 acc).
    h = jnp.dot(pooled, w1_ref[...],
                preferred_element_type=jnp.float32)            # (bn, C//r)
    h = jnp.maximum(h, 0.0)
    z = jnp.dot(h, w2_ref[...],
                preferred_element_type=jnp.float32)            # (bn, C)
    gate = pl.reciprocal(1.0 + jnp.exp(-z))                    # sigmoid: EUP exp + recip
    # Scale: per-channel gate broadcast along the lane-dense spatial axis.
    # Keep x in its native dtype; only the (bn, C) gate gets cast.
    o_ref[...] = (x * gate[:, :, None].astype(x.dtype)).astype(o_ref.dtype)


# ----------------------------------------------------------------------------
# Wrapper
# ----------------------------------------------------------------------------
def _pick_block_n(N, per_image_bytes, budget_bytes=8 << 20):
    """Largest divisor of N whose (in + out) block footprint fits the budget."""
    best = 1
    for bn in range(1, N + 1):
        if N % bn == 0 and 2 * bn * per_image_bytes <= budget_bytes:
            best = bn
    return best


def se_layer(x, w1, w2, *, block_n=None):
    """SELayer forward.

    x  : (N, C, H, W)  NCHW, matching the PyTorch module.
    w1 : (C//r, C)     first Linear weight (PyTorch (out, in) layout, no bias).
    w2 : (C, C//r)     second Linear weight (no bias).
    """
    N, C, H, W = x.shape
    Cr = w1.shape[0]
    HW = H * W

    # Lane-dense view: spatial axis (H*W) on lanes, channels on sublanes.
    x3 = x.reshape(N, C, HW)
    w1t = jnp.transpose(w1)                                   # (C, C//r)
    w2t = jnp.transpose(w2)                                   # (C//r, C)

    if block_n is None:
        bn = _pick_block_n(N, C * HW * x.dtype.itemsize)
    else:
        bn = min(block_n, N)
    assert N % bn == 0, "batch must divide evenly into batch blocks"

    kern = functools.partial(_se_kernel, inv_hw=1.0 / float(HW))
    out = pl.pallas_call(
        kern,
        out_shape=jax.ShapeDtypeStruct((N, C, HW), x.dtype),
        grid=(N // bn,),
        in_specs=[
            pl.BlockSpec((bn, C, HW), lambda n: (n, 0, 0)),
            pl.BlockSpec((C, Cr), lambda n: (0, 0)),
            pl.BlockSpec((Cr, C), lambda n: (0, 0)),
        ],
        out_specs=pl.BlockSpec((bn, C, HW), lambda n: (n, 0, 0)),
        compiler_params=pltpu.CompilerParams(
            dimension_semantics=("parallel",)),
    )(x3, w1t, w2t)
    return out.reshape(N, C, H, W)


# ----------------------------------------------------------------------------
# Pure-JAX reference (mirrors the PyTorch module)
# ----------------------------------------------------------------------------
def se_ref(x, w1, w2):
    y = jnp.mean(x, axis=(2, 3))                              # (N, C)
    y = jnp.maximum(y @ w1.T, 0.0)                            # (N, C//r)
    y = jax.nn.sigmoid(y @ w2.T)                              # (N, C)
    return x * y[:, :, None, None]


# ----------------------------------------------------------------------------
if __name__ == "__main__":
    key = jax.random.PRNGKey(0)
    kx, k1, k2 = jax.random.split(key, 3)

    # Small shapes consistent with SELayer(channel=64, reduction=16).
    N, C, H, W = 2, 64, 16, 16
    reduction = 16
    Cr = C // reduction

    x = jax.random.normal(kx, (N, C, H, W), jnp.float32)
    w1 = jax.random.normal(k1, (Cr, C), jnp.float32) * (1.0 / jnp.sqrt(float(C)))
    w2 = jax.random.normal(k2, (C, Cr), jnp.float32) * (1.0 / jnp.sqrt(float(Cr)))

    out = jax.jit(se_layer)(x, w1, w2)
    out = jax.block_until_ready(out)

    ref = se_ref(x, w1, w2)
    assert out.shape == x.shape, (out.shape, x.shape)
    assert bool(jnp.all(jnp.isfinite(out)))
    assert bool(jnp.allclose(out, ref, atol=1e-4, rtol=1e-4)), \
        float(jnp.max(jnp.abs(out - ref)))
    print("KERNEL_OK")
</pallas_src>

<mosaic_0001>
module attributes {stable_mosaic.version = 11 : i64} {
  func.func @_se_kernel(%arg0: i32, %arg1: memref<2x64x256xf32, #tpu.memory_space<vmem>>, %arg2: memref<64x4xf32, #tpu.memory_space<vmem>>, %arg3: memref<4x64xf32, #tpu.memory_space<vmem>>, %arg4: memref<2x64x256xf32, #tpu.memory_space<vmem>>) attributes {dimension_semantics = [#tpu.dimension_semantics<parallel>], iteration_bounds = array<i64: 1>, scalar_prefetch = 0 : i64, scratch_operands = 0 : i64, tpu.core_type = #tpu.core_type<tc>, window_params = [{transform_indices = @transform_0, window_bounds = array<i64: 2, 64, 256>}, {pipeline_mode = #tpu.pipeline_mode<synchronous>, transform_indices = @transform_1, window_bounds = array<i64: 64, 4>}, {pipeline_mode = #tpu.pipeline_mode<synchronous>, transform_indices = @transform_2, window_bounds = array<i64: 4, 64>}, {transform_indices = @transform_3, window_bounds = array<i64: 2, 64, 256>}]} {
    %c0 = arith.constant 0 : index
    %c0_0 = arith.constant 0 : index
    %c0_1 = arith.constant 0 : index
    %0 = vector.load %arg1[%c0, %c0_0, %c0_1] : memref<2x64x256xf32, #tpu.memory_space<vmem>>, vector<2x64x256xf32>
    %cst = arith.constant dense<0.000000e+00> : vector<2x64xf32>
    %1 = vector.multi_reduction <add>, %0, %cst [2] : vector<2x64x256xf32> to vector<2x64xf32>
    %cst_2 = arith.constant 3.906250e-03 : f32
    %2 = vector.broadcast %cst_2 : f32 to vector<2x64xf32>
    %3 = arith.mulf %1, %2 : vector<2x64xf32>
    %c0_3 = arith.constant 0 : index
    %c0_4 = arith.constant 0 : index
    %4 = vector.load %arg2[%c0_3, %c0_4] : memref<64x4xf32, #tpu.memory_space<vmem>>, vector<64x4xf32>
    %cst_5 = arith.constant dense<0.000000e+00> : vector<2x4xf32>
    %5 = tpu.matmul %3, %4, %cst_5 {dimension_numbers = #tpu.dot_dimension_numbers<[1], [0], [0], [1], [0, 0, 1, 1], [], []>} : vector<2x64xf32>, vector<64x4xf32>, vector<2x4xf32> -> vector<2x4xf32>
    %cst_6 = arith.constant 0.000000e+00 : f32
    %6 = vector.broadcast %cst_6 : f32 to vector<2x4xf32>
    %7 = arith.maximumf %5, %6 : vector<2x4xf32>
    %c0_7 = arith.constant 0 : index
    %c0_8 = arith.constant 0 : index
    %8 = vector.load %arg3[%c0_7, %c0_8] : memref<4x64xf32, #tpu.memory_space<vmem>>, vector<4x64xf32>
    %cst_9 = arith.constant dense<0.000000e+00> : vector<2x64xf32>
    %9 = tpu.matmul %7, %8, %cst_9 {dimension_numbers = #tpu.dot_dimension_numbers<[1], [0], [0], [1], [0, 0, 1, 1], [], []>} : vector<2x4xf32>, vector<4x64xf32>, vector<2x64xf32> -> vector<2x64xf32>
    %cst_10 = arith.constant 0.000000e+00 : f32
    %10 = vector.broadcast %cst_10 : f32 to vector<2x64xf32>
    %11 = arith.subf %10, %9 : vector<2x64xf32>
    %12 = math.exp %11 : vector<2x64xf32>
    %cst_11 = arith.constant 1.000000e+00 : f32
    %13 = vector.broadcast %cst_11 : f32 to vector<2x64xf32>
    %14 = arith.addf %13, %12 : vector<2x64xf32>
    %15 = tpu.reciprocal %14 : vector<2x64xf32> -> vector<2x64xf32>
    %16 = vector.shape_cast %15 : vector<2x64xf32> to vector<2x64x1xf32>
    %17 = vector.broadcast %16 : vector<2x64x1xf32> to vector<2x64x256xf32>
    %18 = arith.mulf %0, %17 : vector<2x64x256xf32>
    %c0_12 = arith.constant 0 : index
    %c0_13 = arith.constant 0 : index
    %c0_14 = arith.constant 0 : index
    %19 = vector.load %arg4[%c0_12, %c0_13, %c0_14] : memref<2x64x256xf32, #tpu.memory_space<vmem>>, vector<2x64x256xf32>
    tpu.vector_store %arg4[%c0_12, %c0_13, %c0_14], %18 {strides = array<i32>} : memref<2x64x256xf32, #tpu.memory_space<vmem>>, vector<2x64x256xf32>,
    return
  }
  func.func @transform_0(%arg0: i32) -> (i32, i32, i32) {
    %c0_i32 = arith.constant 0 : i32
    %c0_i32_0 = arith.constant 0 : i32
    %c0_i32_1 = arith.constant 0 : i32
    return %arg0, %c0_i32, %c0_i32_0 : i32, i32, i32
  }
  func.func @transform_1(%arg0: i32) -> (i32, i32) {
    %c0_i32 = arith.constant 0 : i32
    %c0_i32_0 = arith.constant 0 : i32
    %c0_i32_1 = arith.constant 0 : i32
    return %c0_i32, %c0_i32_0 : i32, i32
  }
  func.func @transform_2(%arg0: i32) -> (i32, i32) {
    %c0_i32 = arith.constant 0 : i32
    %c0_i32_0 = arith.constant 0 : i32
    %c0_i32_1 = arith.constant 0 : i32
    return %c0_i32, %c0_i32_0 : i32, i32
  }
  func.func @transform_3(%arg0: i32) -> (i32, i32, i32) {
    %c0_i32 = arith.constant 0 : i32
    %c0_i32_0 = arith.constant 0 : i32
    %c0_i32_1 = arith.constant 0 : i32
    return %arg0, %c0_i32, %c0_i32_0 : i32, i32, i32
  }
}

</mosaic_0001>

<bundles_post_ra>
// kernel: se_layer.1
= control target key start
LH: loop header
LB: loop body
LE: loop exit
PB: predicated region body
PF: predicated region fallthrough
CT: control target
= control target key end

     0   :  { %vm139_vm0 = vcmask 130112   ;;  %vm143_vm1 = vcmask 195712   ;;  %vm147_vm2 = vcmask 261312   ;;  %vm151_vm3 = vcmask 326912   ;;  %s820_s0 = inlined_call_operand.vmem [shape: f32[2,64,256], index: 0, kind: input, shape index: {}]   ;;  %s821_s1 = inlined_call_operand.vmem [shape: f32[64,4], index: 1, kind: input, shape index: {}]   ;;  %s822_s2 = inlined_call_operand.vmem [shape: f32[4,64], index: 2, kind: input, shape index: {}]   ;;  %s823_s3 = inlined_call_operand.vmem [shape: f32[2,64,256], index: 3, kind: output, shape index: {}]  }
   0x1   :  { %v466_v0 = vld [vmem:[%s820_s0 + $0x80] sm:$0xff]  ;;  %v471_v1 = vld [vmem:[%s820_s0 + $0x88] sm:$0xff]  ;;  %v502_v9 = vld [vmem:[%s820_s0 + $0x90] sm:$0xff]  ;;  %vm155_vm4 = vcmask 392512   ;;  %vm159_vm5 = vcmask 458112   ;;  %vm163_vm6 = vcmask 523712  }
   0x2   :  { %v476_v2 = vld [vmem:[%s820_s0] sm:$0xff]  ;;  %v70_v3 = vadd.f32 %v471_v1, %v466_v0  ;;  %v483_v4 = vld [vmem:[%s820_s0 + $0x8] sm:$0xff]  ;;  %v507_v10 = vld [vmem:[%s820_s0 + $0x98] sm:$0xff]  ;;  %vm180_vm7 = vcmask 1041409   ;;  %vm182_vm8 = vcmask 523264   ;;  %vm211_vm9 = vcmask 1043456  }
   0x3   :  { %v488_v5 = vld [vmem:[%s820_s0 + $0x20] sm:$0xff]  ;;  %v493_v6 = vld [vmem:[%s820_s0 + $0x28] sm:$0xff]  ;;  %v46_v7 = vadd.f32 %v483_v4, %v476_v2  ;;  %v512_v11 = vld [vmem:[%s820_s0 + $0x10] sm:$0xff]  ;;  %v73_v15 = vadd.f32 %v507_v10, %v502_v9  ;;  %vm207_vm10 = vcmask 31744  }
   0x4   :  { %v52_v8 = vadd.f32 %v493_v6, %v488_v5  ;;  %71 = vadd.xlane.f32.xlu1 %v70_v3  ;;  %v517_v12 = vld [vmem:[%s820_s0 + $0x18] sm:$0xff]  ;;  %v522_v13 = vld [vmem:[%s820_s0 + $0xa0] sm:$0xff]  ;;  %v527_v14 = vld [vmem:[%s820_s0 + $0xa8] sm:$0xff] }
   0x5   :  { %47 = vadd.xlane.f32.xlu0 %v46_v7  ;;  %v49_v16 = vadd.f32 %v517_v12, %v512_v11  ;;  %v76_v17 = vadd.f32 %v527_v14, %v522_v13  ;;  %v538_v18 = vld [vmem:[%s820_s0 + $0xb0] sm:$0xff]  ;;  %v543_v19 = vld [vmem:[%s820_s0 + $0xb8] sm:$0xff]  ;;  %v558_v22 = vld [vmem:[%s820_s0 + $0x40] sm:$0xff]  ;;  %v824_v7 = vlaneseq }
   0x6   :  { %53 = vadd.xlane.f32.xlu2 %v52_v8  ;;  %v548_v20 = vld [vmem:[%s820_s0 + $0x30] sm:$0xff]  ;;  %v553_v21 = vld [vmem:[%s820_s0 + $0x38] sm:$0xff]  ;;  %v563_v23 = vld [vmem:[%s820_s0 + $0x48] sm:$0xff]  ;;  %v79_v24 = vadd.f32 %v543_v19, %v538_v18 }
   0x7   :  { %v55_v25 = vadd.f32 %v553_v21, %v548_v20  ;;  %v58_v26 = vadd.f32 %v563_v23, %v558_v22  ;;  %v574_v27 = vld [vmem:[%s820_s0 + $0x50] sm:$0xff]  ;;  %v579_v28 = vld [vmem:[%s820_s0 + $0x58] sm:$0xff]  ;;  %v584_v29 = vld [vmem:[%s820_s0 + $0xc0] sm:$0xff]  ;;  %v135_v8 = vand.u32 127, %v824_v7 }
   0x8   :  { %v589_v30 = vld [vmem:[%s820_s0 + $0xc8] sm:$0xff]  ;;  %v594_v31 = vld [vmem:[%s820_s0 + $0xd0] sm:$0xff]  ;;  %v599_v32 = vld [vmem:[%s820_s0 + $0xd8] sm:$0xff]  ;;  %v61_v33 = vadd.f32 %v579_v28, %v574_v27 }
   0x9   :  { %827 = vst [vmem:[#allocation2_spill] sm:$0xff] %v594_v31  ;;  %v82_v34 = vadd.f32 %v589_v30, %v584_v29  ;;  %v85_v35 = vadd.f32 %v599_v32, %v594_v31  ;;  %v610_v36 = vld [vmem:[%s820_s0 + $0xe0] sm:$0xff]  ;;  %v615_v37 = vld [vmem:[%s820_s0 + $0xe8] sm:$0xff]  ;;  %v630_v40 = vld [vmem:[%s820_s0 + $0x70] sm:$0xff] }
   0xa   :  { %828 = vst [vmem:[#allocation3_spill] sm:$0xff] %v599_v32  ;;  %v620_v38 = vld [vmem:[%s820_s0 + $0x60] sm:$0xff]  ;;  %v625_v39 = vld [vmem:[%s820_s0 + $0x68] sm:$0xff]  ;;  %v635_v41 = vld [vmem:[%s820_s0 + $0x78] sm:$0xff]  ;;  %v88_v42 = vadd.f32 %v615_v37, %v610_v36 }
   0xb   :  { %v64_v43 = vadd.f32 %v625_v39, %v620_v38  ;;  %v67_v44 = vadd.f32 %v635_v41, %v630_v40  ;;  %v646_v45 = vld [vmem:[%s820_s0 + $0xf0] sm:$0xff]  ;;  %v651_v46 = vld [vmem:[%s820_s0 + $0xf8] sm:$0xff]  ;;  %v115_v53 = vld [vmem:[%s821_s1 + $0x28] sm:$0xff] }
   0xc   :  { %74 = vadd.xlane.f32.xlu1 %v73_v15  ;;  %v91_v47 = vadd.f32 %v651_v46, %v646_v45  ;;  %v117_v48 = vld [vmem:[%s821_s1 + $0x38] sm:$0xff]  ;;  %v116_v52 = vld [vmem:[%s821_s1 + $0x30] sm:$0xff]  ;;  %v114_v54 = vld [vmem:[%s821_s1 + $0x20] sm:$0xff] }
   0xd   :  { %50 = vadd.xlane.f32.xlu0 %v49_v16  ;;  %193 = vmatpush.msra.mxu0 %v117_v48  ;;  %v113_v55 = vld [vmem:[%s821_s1 + $0x18] sm:$0xff]  ;;  %v112_v59 = vld [vmem:[%s821_s1 + $0x10] sm:$0xff]  ;;  %v111_v60 = vld [vmem:[%s821_s1 + $0x8] sm:$0xff] }
   0xe   :  { %77 = vadd.xlane.f32.xlu2 %v76_v17  ;;  %v110_v61 = vld [vmem:[%s821_s1] sm:$0xff] }
   0xf   :  { %194 = vmatpush.msra.mxu0 %v116_v52 }
  0x11   :  { %195 = vmatpush.msra.mxu0 %v115_v53 }
  0x13   :  { %196 = vmatpush.msra.mxu0 %v114_v54 }
  0x14   :  { %80 = vadd.xlane.f32.xlu1 %v79_v24  ;;  %v137_v24 = vadd.s32 4294967288, %v135_v8 }
  0x15   :  { %56 = vadd.xlane.f32.xlu0 %v55_v25  ;;  %197 = vmatpush.msra.mxu0 %v113_v55 }
  0x16   :  { %59 = vadd.xlane.f32.xlu2 %v58_v26 }
  0x17   :  { %198 = vmatpush.msra.mxu0 %v112_v59 }
  0x19   :  { %199 = vmatpush.msra.mxu0 %v111_v60  ;;  %v149_v60 = vadd.s32 4294967264, %v135_v8 }
  0x1b   :  { %200 = vmatpush.msra.mxu0 %v110_v61 }
  0x1c   :  { %62 = vadd.xlane.f32.xlu1 %v61_v33 }
  0x1d   :  { %83 = vadd.xlane.f32.xlu0 %v82_v34 }
  0x1e   :  { %86 = vadd.xlane.f32.xlu2 %v85_v35  ;;  %v141_v35 = vadd.s32 4294967280, %v135_v8 }
  0x24   :  { %89 = vadd.xlane.f32.xlu1 %v88_v42 }
  0x25   :  { %65 = vadd.xlane.f32.xlu0 %v64_v43 }
  0x26   :  { %68 = vadd.xlane.f32.xlu2 %v67_v44  ;;  %v145_v44 = vadd.s32 4294967272, %v135_v8 }
  0x2d   :  { %92 = vadd.xlane.f32.xlu0 %v91_v47 }
  0x77   :  { %v72_v49 = vpop.xlane.xlu1 %71 }
  0x78   :  { %v48_v50 = vpop.xlane.xlu0 %47  ;;  %v102_v26 = vmul.f32 0.00390625, %v72_v49 }
  0x79   :  { %v54_v51 = vpop.xlane.xlu2 %53  ;;  %v94_v33 = vmul.f32 0.00390625, %v48_v50 }
  0x7a   :  { %v96_v42 = vmul.f32 0.00390625, %v54_v51  ;;  %v165_v52 = vperm.slane %v102_v26, %v135_v8 }
  0x7b   :  { %v136_v53 = vperm.slane %v94_v33, %v135_v8 }
  0x7c   :  { %v142_v59 = vperm.slane %v96_v42, %v141_v35 }
  0x7f   :  { %v75_v56 = vpop.xlane.xlu1 %74 }
  0x80   :  { %v51_v57 = vpop.xlane.xlu0 %50  ;;  %v103_v34 = vmul.f32 0.00390625, %v75_v56  ;;  %v153_v56 = vadd.s32 4294967256, %v135_v8 }
  0x81   :  { %v78_v58 = vpop.xlane.xlu2 %77  ;;  %v95_v25 = vmul.f32 0.00390625, %v51_v57 }
  0x82   :  { %v104_v48 = vmul.f32 0.00390625, %v78_v58  ;;  %v166_v54 = vperm.slane %v103_v34, %v137_v24 }
  0x83   :  { %v138_v43 = vperm.slane %v95_v25, %v137_v24 }
  0x84   :  { %v168_v32 = vperm.slane %v104_v48, %v141_v35  ;;  %v167_v26 = vsel %vm139_vm0, %v166_v54, %v165_v52 }
  0x85   :  { %v140_v49 = vsel %vm139_vm0, %v138_v43, %v136_v53 }
  0x86   :  { %v169_v35 = vsel %vm143_vm1, %v168_v32, %v167_v26 }
  0x87   :  { %v81_v62 = vpop.xlane.xlu1 %80 }
  0x88   :  { %v57_v63 = vpop.xlane.xlu0 %56  ;;  %v105_v55 = vmul.f32 0.00390625, %v81_v62 }
  0x89   :  { %v60_v3 = vpop.xlane.xlu2 %59  ;;  %v97_v47 = vmul.f32 0.00390625, %v57_v63  ;;  %v157_v63 = vadd.s32 4294967248, %v135_v8 }
  0x8a   :  { %v98_v61 = vmul.f32 0.00390625, %v60_v3  ;;  %v170_v24 = vperm.slane %v105_v55, %v145_v44  ;;  %v144_v3 = vsel %vm143_vm1, %v142_v59, %v140_v49 }
  0x8b   :  { %v146_v50 = vperm.slane %v97_v47, %v145_v44 }
  0x8c   :  { %v171_v53 = vsel %vm147_vm2, %v170_v24, %v169_v35 }
  0x8d   :  { %v148_v42 = vsel %vm147_vm2, %v146_v50, %v144_v3 }
  0x8f   :  { %v63_v15 = vpop.xlane.xlu1 %62 }
  0x90   :  { %v84_v16 = vpop.xlane.xlu0 %83  ;;  %v99_v51 = vmul.f32 0.00390625, %v63_v15  ;;  %v161_v15 = vadd.s32 4294967240, %v135_v8 }
  0x91   :  { %v87_v17 = vpop.xlane.xlu2 %86  ;;  %v106_v7 = vmul.f32 0.00390625, %v84_v16  ;;  %v150_v16 = vperm.slane %v98_v61, %v149_v60 }
  0x92   :  { %v107_v62 = vmul.f32 0.00390625, %v87_v17  ;;  %v154_v43 = vperm.slane %v99_v51, %v153_v56 }
  0x93   :  { %v172_v33 = vperm.slane %v106_v7, %v149_v60  ;;  %v152_v17 = vsel %vm151_vm3, %v150_v16, %v148_v42 }
  0x94   :  { %v174_v52 = vperm.slane %v107_v62, %v153_v56  ;;  %v156_v55 = vsel %vm155_vm4, %v154_v43, %v152_v17  ;;  %v206_v56 = vld [vmem:[%s822_s2] sm:$0xf] }
  0x95   :  { %v173_v44 = vsel %vm151_vm3, %v172_v33, %v171_v53  ;;  %420 = vmatpush.msk.msra.mxu1 %vm211_vm9, %v206_v56 }
  0x96   :  { %v175_v8 = vsel %vm155_vm4, %v174_v52, %v173_v44 }
  0x97   :  { %v90_v25 = vpop.xlane.xlu1 %89 }
  0x98   :  { %v66_v57 = vpop.xlane.xlu0 %65  ;;  %v108_v34 = vmul.f32 0.00390625, %v90_v25 }
  0x99   :  { %v100_v31 = vmul.f32 0.00390625, %v66_v57  ;;  %v69_v58 = vpop.xlane.xlu2 %68 }
  0x9a   :  { %v101_v47 = vmul.f32 0.00390625, %v69_v58  ;;  %v176_v54 = vperm.slane %v108_v34, %v157_v63 }
  0x9b   :  { %v158_v48 = vperm.slane %v100_v31, %v157_v63  ;;  %v829_v63 = vlaneseq }
  0x9c   :  { %v162_v59 = vperm.slane %v101_v47, %v161_v15  ;;  %v177_v32 = vsel %vm159_vm5, %v176_v54, %v175_v8 }
  0x9d   :  { %v160_v61 = vsel %vm159_vm5, %v158_v48, %v156_v55  ;;  %v255_v58 = vshrl.u32 %v829_v63, 7 }
  0x9e   :  { %v164_v31 = vsel %vm163_vm6, %v162_v59, %v160_v61 }
  0x9f   :  { %422 = vset.pattern.permute.xlu1 %v255_v58  ;;  %v268_v26 = vadd.s32 16, %v255_v58  ;;  %v262_v24 = vadd.s32 8, %v255_v58  ;;  %v280_v55 = vadd.s32 32, %v255_v58  ;;  %v286_v61 = vadd.s32 40, %v255_v58 }
  0xa0   :  { %v93_v7 = vpop.xlane.xlu0 %92  ;;  %v298_v8 = vadd.s32 56, %v255_v58 }
  0xa1   :  { %v109_v60 = vmul.f32 0.00390625, %v93_v7  ;;  %424 = vset.pattern.permute.xlu0 %v268_v26  ;;  %423 = vset.pattern.permute.xlu2 %v262_v24  ;;  %v274_v7 = vadd.s32 24, %v255_v58 }
  0xa3   :  { %v178_v57 = vperm.slane %v109_v60, %v161_v15  ;;  %v292_v60 = vadd.s32 48, %v255_v58 }
  0xa5   :  { %v179_v49 = vsel %vm163_vm6, %v178_v57, %v177_v32 }
  0xa6   :  { %v181_v50 = vsel %vm180_vm7, %v179_v49, %v164_v31 }
  0xa7   :  { %419 = vmatmul.msk.f32.vlgmr.msra.gmra.mxu0 %vm182_vm8, %v181_v50 }
 0x124   :  { %v202_v51 = vpop.f32.mrf.mxu0 }
 0x125   :  { %v205_v25 = vmax.f32 %v202_v51, 0.0 }
 0x127   :  { %421 = vmatmul.msk.f32.vlgmr.msra.gmra.mxu1 %vm207_vm10, %v205_v25 }
 0x1a4   :  { %v232_v62 = vpop.f32.mrf.mxu1 }
 0x1a5   :  { %v235_v3 = vsub.f32 0.0, %v232_v62 }
 0x1a7   :  { %v236_v16 = vmul.f32 1.442695, %v235_v3 }
 0x1a9   :  { %439 = vpow2.f32 %v236_v16 }
 0x1af   :  { %v440_v33 = vpop.eup %439 }
 0x1b0   :  { %v238_v34 = vadd.f32 1.0, %v440_v33 }
 0x1b2   :  { %441 = vrcp.f32 %v238_v34  ;;  %v250_v47 = vand.u32 2147483648, %v238_v34  ;;  %v248_v48 = vand.u32 2147483647, %v238_v34  ;;  %vm244_vm12 = vweird.f32 %v238_v34 }
 0x1b4   :  { %v251_v52 = vor.u32 1.1754944e-38, %v250_v47  ;;  %vm249_vm14 = vcmp.eq.f32.partialorder %v248_v48, 8.507059e+37  ;;  %v831_v47 = vld [vmem:[#allocation3_spill] sm:$0xff] }
 0x1b8   :  { %v442_v42 = vpop.eup %441 }
 0x1b9   :  { %v240_v43 = vmul.f32 %v442_v42, %v238_v34  ;;  %vm245_vm11 = vweird.f32 %v442_v42 }
 0x1ba   :  { %vm246_vm13 = vmor %vm244_vm12, %vm245_vm11 }
 0x1bb   :  { %v241_v15 = vsub.f32 1.0, %v240_v43 }
 0x1bd   :  { %v242_v35 = vmul.f32 %v442_v42, %v241_v15 }
 0x1bf   :  { %v243_v53 = vadd.f32 %v442_v42, %v242_v35 }
 0x1c1   :  { %v247_v17 = vsel %vm246_vm13, %v442_v42, %v243_v53 }
 0x1c2   :  { %v252_v44 = vsel %vm249_vm14, %v251_v52, %v247_v17 }
 0x1c3   :  { %v253_v54 = vperm.slane %v252_v44, 0  ;;  %v302_v59 = vperm.slane %v252_v44, 1 }
 0x1c5   :  { %270 = vperm.xlu0 %424, %v253_v54   ;;  %264 = vperm.xlu2 %423, %v253_v54  }
 0x1c6   :  { %258 = vperm.xlu1 %422, %v253_v54  }
 0x1cd   :  { %431 = vset.pattern.permute.xlu0 %v262_v24  ;;  %425 = vset.pattern.permute.xlu2 %v274_v7 }
 0x1ce   :  { %426 = vset.pattern.permute.xlu1 %v280_v55 }
 0x1d5   :  { %313 = vperm.xlu0 %431, %v302_v59   ;;  %276 = vperm.xlu2 %425, %v253_v54  }
 0x1d6   :  { %282 = vperm.xlu1 %426, %v253_v54  }
 0x1dd   :  { %436 = vset.pattern.permute.xlu0 %v292_v60  ;;  %427 = vset.pattern.permute.xlu2 %v286_v61 }
 0x1de   :  { %428 = vset.pattern.permute.xlu1 %v292_v60 }
 0x1e5   :  { %343 = vperm.xlu0 %436, %v302_v59   ;;  %288 = vperm.xlu2 %427, %v253_v54  }
 0x1e6   :  { %294 = vperm.xlu1 %428, %v253_v54  }
 0x1ed   :  { %429 = vset.pattern.permute.xlu2 %v298_v8  ;;  %438 = vset.pattern.permute.xlu0 %v298_v8 }
 0x1ee   :  { %430 = vset.pattern.permute.xlu1 %v255_v58 }
 0x1f5   :  { %300 = vperm.xlu2 %429, %v253_v54  }
 0x1f6   :  { %307 = vperm.xlu1 %430, %v302_v59  }
 0x1fd   :  { %432 = vset.pattern.permute.xlu2 %v268_v26 }
 0x1fe   :  { %433 = vset.pattern.permute.xlu1 %v274_v7 }
 0x205   :  { %319 = vperm.xlu2 %432, %v302_v59  }
 0x206   :  { %325 = vperm.xlu1 %433, %v302_v59  }
 0x20d   :  { %434 = vset.pattern.permute.xlu2 %v280_v55 }
 0x20e   :  { %435 = vset.pattern.permute.xlu1 %v286_v61 }
 0x215   :  { %331 = vperm.xlu2 %434, %v302_v59  }
 0x216   :  { %337 = vperm.xlu1 %435, %v302_v59  }
 0x21d   :  { %437 = vset.pattern.permute.xlu2 %v298_v8 }
 0x21f   :  { %v265_v57 = vpop.permute.xlu2 %264 }
 0x220   :  { %v353_v32 = vmul.f32 %v265_v57, %v512_v11  ;;  %v354_v31 = vmul.f32 %v265_v57, %v517_v12 }
 0x222   :  { %385 = vst [vmem:[%s823_s3 + $0x10] sm:$0xff] %v353_v32 }
 0x223   :  { %386 = vst [vmem:[%s823_s3 + $0x18] sm:$0xff] %v354_v31 }
 0x225   :  { %349 = vperm.xlu2 %437, %v302_v59  }
 0x22f   :  { %v277_v49 = vpop.permute.xlu2 %276 }
 0x230   :  { %v357_v50 = vmul.f32 %v277_v49, %v548_v20  ;;  %v358_v56 = vmul.f32 %v277_v49, %v553_v21 }
 0x232   :  { %389 = vst [vmem:[%s823_s3 + $0x30] sm:$0xff] %v357_v50 }
 0x233   :  { %390 = vst [vmem:[%s823_s3 + $0x38] sm:$0xff] %v358_v56 }
 0x237   :  { %v271_v11 = vpop.permute.xlu0 %270 }
 0x238   :  { %v355_v12 = vmul.f32 %v271_v11, %v488_v5  ;;  %v356_v51 = vmul.f32 %v271_v11, %v493_v6  ;;  %v259_v25 = vpop.permute.xlu1 %258 }
 0x239   :  { %v351_v63 = vmul.f32 %v259_v25, %v476_v2  ;;  %v352_v20 = vmul.f32 %v259_v25, %v483_v4 }
 0x23a   :  { %387 = vst [vmem:[%s823_s3 + $0x20] sm:$0xff] %v355_v12 }
 0x23b   :  { %388 = vst [vmem:[%s823_s3 + $0x28] sm:$0xff] %v356_v51 }
 0x23c   :  { %383 = vst [vmem:[%s823_s3] sm:$0xff] %v351_v63 }
 0x23d   :  { %384 = vst [vmem:[%s823_s3 + $0x8] sm:$0xff] %v352_v20 }
 0x23f   :  { %v289_v5 = vpop.permute.xlu2 %288 }
 0x240   :  { %v361_v2 = vmul.f32 %v289_v5, %v574_v27  ;;  %v362_v4 = vmul.f32 %v289_v5, %v579_v28 }
 0x242   :  { %393 = vst [vmem:[%s823_s3 + $0x50] sm:$0xff] %v361_v2 }
 0x243   :  { %394 = vst [vmem:[%s823_s3 + $0x58] sm:$0xff] %v362_v4 }
 0x247   :  { %v314_v6 = vpop.permute.xlu0 %313 }
 0x248   :  { %v369_v21 = vmul.f32 %v314_v6, %v502_v9  ;;  %v370_v58 = vmul.f32 %v314_v6, %v507_v10  ;;  %v283_v26 = vpop.permute.xlu1 %282 }
 0x249   :  { %v359_v24 = vmul.f32 %v283_v26, %v558_v22  ;;  %v360_v27 = vmul.f32 %v283_v26, %v563_v23 }
 0x24a   :  { %401 = vst [vmem:[%s823_s3 + $0x90] sm:$0xff] %v369_v21 }
 0x24b   :  { %402 = vst [vmem:[%s823_s3 + $0x98] sm:$0xff] %v370_v58 }
 0x24c   :  { %391 = vst [vmem:[%s823_s3 + $0x40] sm:$0xff] %v359_v24 }
 0x24d   :  { %392 = vst [vmem:[%s823_s3 + $0x48] sm:$0xff] %v360_v27 }
 0x24f   :  { %v301_v9 = vpop.permute.xlu2 %300 }
 0x250   :  { %v365_v10 = vmul.f32 %v301_v9, %v630_v40  ;;  %v366_v22 = vmul.f32 %v301_v9, %v635_v41 }
 0x252   :  { %397 = vst [vmem:[%s823_s3 + $0x70] sm:$0xff] %v365_v10 }
 0x253   :  { %398 = vst [vmem:[%s823_s3 + $0x78] sm:$0xff] %v366_v22 }
 0x257   :  { %v344_v23 = vpop.permute.xlu0 %343 }
 0x258   :  { %v379_v28 = vmul.f32 %v344_v23, %v610_v36  ;;  %v380_v62 = vmul.f32 %v344_v23, %v615_v37  ;;  %v295_v3 = vpop.permute.xlu1 %294 }
 0x259   :  { %v363_v16 = vmul.f32 %v295_v3, %v620_v38  ;;  %v364_v40 = vmul.f32 %v295_v3, %v625_v39 }
 0x25a   :  { %411 = vst [vmem:[%s823_s3 + $0xe0] sm:$0xff] %v379_v28 }
 0x25b   :  { %412 = vst [vmem:[%s823_s3 + $0xe8] sm:$0xff] %v380_v62 }
 0x25c   :  { %395 = vst [vmem:[%s823_s3 + $0x60] sm:$0xff] %v363_v16 }
 0x25d   :  { %396 = vst [vmem:[%s823_s3 + $0x68] sm:$0xff] %v364_v40 }
 0x25f   :  { %v320_v36 = vpop.permute.xlu2 %319 }
 0x260   :  { %v371_v37 = vmul.f32 %v320_v36, %v522_v13  ;;  %v372_v38 = vmul.f32 %v320_v36, %v527_v14 }
 0x262   :  { %403 = vst [vmem:[%s823_s3 + $0xa0] sm:$0xff] %v371_v37 }
 0x263   :  { %404 = vst [vmem:[%s823_s3 + $0xa8] sm:$0xff] %v372_v38 }
 0x268   :  { %v308_v39 = vpop.permute.xlu1 %307 }
 0x269   :  { %v367_v41 = vmul.f32 %v308_v39, %v466_v0  ;;  %v368_v33 = vmul.f32 %v308_v39, %v471_v1 }
 0x26b   :  { %399 = vst [vmem:[%s823_s3 + $0x80] sm:$0xff] %v367_v41 }
 0x26c   :  { %400 = vst [vmem:[%s823_s3 + $0x88] sm:$0xff] %v368_v33 }
 0x26f   :  { %v332_v13 = vpop.permute.xlu2 %331 }
 0x270   :  { %v375_v14 = vmul.f32 %v332_v13, %v584_v29  ;;  %v376_v34 = vmul.f32 %v332_v13, %v589_v30 }
 0x272   :  { %407 = vst [vmem:[%s823_s3 + $0xc0] sm:$0xff] %v375_v14 }
 0x273   :  { %408 = vst [vmem:[%s823_s3 + $0xc8] sm:$0xff] %v376_v34 }
 0x278   :  { %v326_v0 = vpop.permute.xlu1 %325 }
 0x279   :  { %v373_v1 = vmul.f32 %v326_v0, %v538_v18  ;;  %v374_v42 = vmul.f32 %v326_v0, %v543_v19  ;;  %v830_v19 = vld [vmem:[#allocation2_spill] sm:$0xff] }
 0x27b   :  { %405 = vst [vmem:[%s823_s3 + $0xb0] sm:$0xff] %v373_v1 }
 0x27c   :  { %406 = vst [vmem:[%s823_s3 + $0xb8] sm:$0xff] %v374_v42 }
 0x27f   :  { %v350_v29 = vpop.permute.xlu2 %349 }
 0x280   :  { %v381_v30 = vmul.f32 %v350_v29, %v646_v45  ;;  %v382_v43 = vmul.f32 %v350_v29, %v651_v46 }
 0x282   :  { %413 = vst [vmem:[%s823_s3 + $0xf0] sm:$0xff] %v381_v30 }
 0x283   :  { %414 = vst [vmem:[%s823_s3 + $0xf8] sm:$0xff] %v382_v43 }
 0x288   :  { %v338_v18 = vpop.permute.xlu1 %337 }
 0x289   :  { %v377_v15 = vmul.f32 %v338_v18, %v830_v19  ;;  %v378_v35 = vmul.f32 %v338_v18, %v831_v47 }
 0x28b   :  { %409 = vst [vmem:[%s823_s3 + $0xd0] sm:$0xff] %v377_v15 }
 0x28c   :  { %410 = vst [vmem:[%s823_s3 + $0xd8] sm:$0xff] %v378_v35 }

</bundles_post_ra>
